<compile_context>
chip_gen: v7x
topology: tpu7x:2x2x1
jax: 0.10.0
libtpu: 0.0.40
codegen_flags: <defaults>
</compile_context>

<pallas_src>
import jax
import jax.numpy as jnp
from jax.experimental import pallas as pl
from jax.experimental.pallas import tpu as pltpu


def _mlp_kernel(x_ref, w1_ref, b1_ref, w2_ref, b2_ref, o_ref):
    # Layer 1: MXU matmul (bf16 in, f32 accumulate) + bias + ReLU.
    h = jnp.dot(x_ref[...], w1_ref[...], preferred_element_type=jnp.float32)
    h = jnp.maximum(h + b1_ref[...], 0.0)          # b1 is (1, H) -> broadcasts
    # Layer 2: classifier head.
    out = jnp.dot(h.astype(w2_ref.dtype), w2_ref[...],
                  preferred_element_type=jnp.float32)
    o_ref[...] = (out + b2_ref[...]).astype(o_ref.dtype)


def _round_up(x, m):
    return (x + m - 1) // m * m


def net_forward(features, w1, b1, w2, b2, *, row_tile=256, use_bf16=True,
                vmem_limit_bytes=64 * 1024 * 1024):
    """Pallas implementation of NET.forward (MLP backbone).

    features: [N, F] node features (rows = nodes, lane axis = feature dim)
    w1: [F, H], b1: [H] or [1, H], w2: [H, C], b2: [C] or [1, C]
    returns:  [N, C] logits in float32.
    """
    n, in_dim = features.shape
    assert w1.shape[0] == in_dim
    hidden = w1.shape[1]
    assert w2.shape[0] == hidden
    n_classes = w2.shape[1]

    # Lane-dense padded dims: last (lane) axes and contraction dims go to
    # multiples of 128 so both matmuls fill the MXU and stores are unmasked.
    in_p = _round_up(in_dim, 128)
    hid_p = _round_up(hidden, 128)
    cls_p = _round_up(n_classes, 128)

    # Row tiling: multiple of 8, no bigger than needed, N padded to a tile
    # multiple (padded rows are sliced off before returning).
    row_tile = _round_up(max(8, min(row_tile, _round_up(n, 8))), 8)
    n_p = _round_up(n, row_tile)

    mm_dtype = jnp.bfloat16 if use_bf16 else jnp.float32

    # Zero padding preserves semantics: extra input columns multiply zero
    # weights, extra hidden units have zero weight+bias (ReLU(0)=0 contributes
    # nothing), extra class columns are dropped by the final slice.
    x_p = jnp.zeros((n_p, in_p), mm_dtype).at[:n, :in_dim].set(
        features.astype(mm_dtype))
    w1_p = jnp.zeros((in_p, hid_p), mm_dtype).at[:in_dim, :hidden].set(
        w1.astype(mm_dtype))
    b1_p = jnp.zeros((1, hid_p), jnp.float32).at[:, :hidden].set(
        jnp.reshape(b1, (1, -1)).astype(jnp.float32))
    w2_p = jnp.zeros((hid_p, cls_p), mm_dtype).at[:hidden, :n_classes].set(
        w2.astype(mm_dtype))
    b2_p = jnp.zeros((1, cls_p), jnp.float32).at[:, :n_classes].set(
        jnp.reshape(b2, (1, -1)).astype(jnp.float32))

    grid = (n_p // row_tile,)

    itemsize = 2 if use_bf16 else 4
    cost = pl.CostEstimate(
        flops=2 * n_p * (in_p * hid_p + hid_p * cls_p),
        transcendentals=0,
        bytes_accessed=(n_p * in_p + in_p * hid_p + hid_p * cls_p) * itemsize
                       + (hid_p + cls_p) * 4 + n_p * cls_p * 4,
    )

    out_p = pl.pallas_call(
        _mlp_kernel,
        out_shape=jax.ShapeDtypeStruct((n_p, cls_p), jnp.float32),
        grid_spec=pltpu.PrefetchScalarGridSpec(
            num_scalar_prefetch=0,
            grid=grid,
            in_specs=[
                pl.BlockSpec((row_tile, in_p), lambda i: (i, 0)),    # x tile
                pl.BlockSpec((in_p, hid_p), lambda i: (0, 0)),       # W1 (grid-invariant)
                pl.BlockSpec((1, hid_p), lambda i: (0, 0)),          # b1
                pl.BlockSpec((hid_p, cls_p), lambda i: (0, 0)),      # W2
                pl.BlockSpec((1, cls_p), lambda i: (0, 0)),          # b2
            ],
            out_specs=pl.BlockSpec((row_tile, cls_p), lambda i: (i, 0)),
        ),
        compiler_params=pltpu.CompilerParams(
            dimension_semantics=("parallel",),
            vmem_limit_bytes=vmem_limit_bytes),
        cost_estimate=cost,
    )(x_p, w1_p, b1_p, w2_p, b2_p)

    # Drop row / class padding.
    return out_p[:n, :n_classes]


def net_forward_ref(features, w1, b1, w2, b2):
    """Plain-JAX (f32) reference for correctness checking."""
    h = jnp.maximum(features @ w1 + jnp.reshape(b1, (1, -1)), 0.0)
    return h @ w2 + jnp.reshape(b2, (1, -1))


def _run_case(key, num_nodes, in_dim, hidden, num_classes):
    k_x, k_w1, k_b1, k_w2, k_b2 = jax.random.split(key, 5)
    features = jax.random.normal(k_x, (num_nodes, in_dim), dtype=jnp.float32)
    w1 = jax.random.normal(k_w1, (in_dim, hidden), dtype=jnp.float32) * 0.1
    b1 = jax.random.normal(k_b1, (1, hidden), dtype=jnp.float32) * 0.01
    w2 = jax.random.normal(k_w2, (hidden, num_classes), dtype=jnp.float32) * 0.1
    b2 = jax.random.normal(k_b2, (1, num_classes), dtype=jnp.float32) * 0.01

    out = jax.block_until_ready(net_forward(features, w1, b1, w2, b2))
    ref = net_forward_ref(features, w1, b1, w2, b2)

    assert out.shape == (num_nodes, num_classes)
    # bf16 matmul inputs with f32 accumulation -> loose tolerance vs f32 ref.
    assert jnp.allclose(out, ref, atol=3e-2, rtol=3e-2), "mismatch vs reference"


if __name__ == "__main__":
    key = jax.random.PRNGKey(0)
    k0, k1 = jax.random.split(key)

    # Small shapes consistent with NET.forward(features) -> logits.
    # Case 1: node count not a multiple of 8, narrow dims (exercises padding).
    _run_case(k0, num_nodes=50, in_dim=32, hidden=32, num_classes=16)
    # Case 2: ragged dims on every axis (row, contraction, lane padding paths).
    _run_case(k1, num_nodes=200, in_dim=140, hidden=64, num_classes=70)

    # TODO(synk): NET.observe (cross-entropy loss + Adam step) is training
    # logic outside the forward pass and is not implemented as a kernel.
    print("KERNEL_OK")
</pallas_src>

<mosaic_0001>
module attributes {stable_mosaic.version = 11 : i64} {
  func.func @_mlp_kernel(%arg0: i32, %arg1: memref<56x128xbf16, #tpu.memory_space<vmem>>, %arg2: memref<128x128xbf16, #tpu.memory_space<vmem>>, %arg3: memref<1x128xf32, #tpu.memory_space<vmem>>, %arg4: memref<128x128xbf16, #tpu.memory_space<vmem>>, %arg5: memref<1x128xf32, #tpu.memory_space<vmem>>, %arg6: memref<56x128xf32, #tpu.memory_space<vmem>>) attributes {dimension_semantics = [#tpu.dimension_semantics<parallel>], iteration_bounds = array<i64: 1>, scalar_prefetch = 0 : i64, scratch_operands = 0 : i64, tpu.core_type = #tpu.core_type<tc>, window_params = [{transform_indices = @transform_0, window_bounds = array<i64: 56, 128>}, {pipeline_mode = #tpu.pipeline_mode<synchronous>, transform_indices = @transform_1, window_bounds = array<i64: 128, 128>}, {pipeline_mode = #tpu.pipeline_mode<synchronous>, transform_indices = @transform_2, window_bounds = array<i64: 1, 128>}, {pipeline_mode = #tpu.pipeline_mode<synchronous>, transform_indices = @transform_3, window_bounds = array<i64: 128, 128>}, {pipeline_mode = #tpu.pipeline_mode<synchronous>, transform_indices = @transform_4, window_bounds = array<i64: 1, 128>}, {transform_indices = @transform_5, window_bounds = array<i64: 56, 128>}]} {
    %c0 = arith.constant 0 : index
    %c0_0 = arith.constant 0 : index
    %0 = vector.load %arg1[%c0, %c0_0] : memref<56x128xbf16, #tpu.memory_space<vmem>>, vector<56x128xbf16>
    %c0_1 = arith.constant 0 : index
    %c0_2 = arith.constant 0 : index
    %1 = vector.load %arg2[%c0_1, %c0_2] : memref<128x128xbf16, #tpu.memory_space<vmem>>, vector<128x128xbf16>
    %cst = arith.constant dense<0.000000e+00> : vector<56x128xf32>
    %2 = tpu.matmul %0, %1, %cst {dimension_numbers = #tpu.dot_dimension_numbers<[1], [0], [0], [1], [0, 0, 1, 1], [], []>} : vector<56x128xbf16>, vector<128x128xbf16>, vector<56x128xf32> -> vector<56x128xf32>
    %c0_3 = arith.constant 0 : index
    %c0_4 = arith.constant 0 : index
    %3 = vector.load %arg3[%c0_3, %c0_4] : memref<1x128xf32, #tpu.memory_space<vmem>>, vector<1x128xf32>
    %4 = vector.broadcast %3 : vector<1x128xf32> to vector<56x128xf32>
    %5 = arith.addf %2, %4 : vector<56x128xf32>
    %cst_5 = arith.constant 0.000000e+00 : f32
    %6 = vector.broadcast %cst_5 : f32 to vector<56x128xf32>
    %7 = arith.maximumf %5, %6 : vector<56x128xf32>
    %8 = arith.truncf %7 : vector<56x128xf32> to vector<56x128xbf16>
    %c0_6 = arith.constant 0 : index
    %c0_7 = arith.constant 0 : index
    %9 = vector.load %arg4[%c0_6, %c0_7] : memref<128x128xbf16, #tpu.memory_space<vmem>>, vector<128x128xbf16>
    %cst_8 = arith.constant dense<0.000000e+00> : vector<56x128xf32>
    %10 = tpu.matmul %8, %9, %cst_8 {dimension_numbers = #tpu.dot_dimension_numbers<[1], [0], [0], [1], [0, 0, 1, 1], [], []>} : vector<56x128xbf16>, vector<128x128xbf16>, vector<56x128xf32> -> vector<56x128xf32>
    %c0_9 = arith.constant 0 : index
    %c0_10 = arith.constant 0 : index
    %11 = vector.load %arg5[%c0_9, %c0_10] : memref<1x128xf32, #tpu.memory_space<vmem>>, vector<1x128xf32>
    %12 = vector.broadcast %11 : vector<1x128xf32> to vector<56x128xf32>
    %13 = arith.addf %10, %12 : vector<56x128xf32>
    %c0_11 = arith.constant 0 : index
    %c0_12 = arith.constant 0 : index
    %14 = vector.load %arg6[%c0_11, %c0_12] : memref<56x128xf32, #tpu.memory_space<vmem>>, vector<56x128xf32>
    tpu.vector_store %arg6[%c0_11, %c0_12], %13 {strides = array<i32>} : memref<56x128xf32, #tpu.memory_space<vmem>>, vector<56x128xf32>,
    return
  }
  func.func @transform_0(%arg0: i32) -> (i32, i32) {
    %c0_i32 = arith.constant 0 : i32
    %c0_i32_0 = arith.constant 0 : i32
    return %arg0, %c0_i32 : i32, i32
  }
  func.func @transform_1(%arg0: i32) -> (i32, i32) {
    %c0_i32 = arith.constant 0 : i32
    %c0_i32_0 = arith.constant 0 : i32
    %c0_i32_1 = arith.constant 0 : i32
    return %c0_i32, %c0_i32_0 : i32, i32
  }
  func.func @transform_2(%arg0: i32) -> (i32, i32) {
    %c0_i32 = arith.constant 0 : i32
    %c0_i32_0 = arith.constant 0 : i32
    %c0_i32_1 = arith.constant 0 : i32
    return %c0_i32, %c0_i32_0 : i32, i32
  }
  func.func @transform_3(%arg0: i32) -> (i32, i32) {
    %c0_i32 = arith.constant 0 : i32
    %c0_i32_0 = arith.constant 0 : i32
    %c0_i32_1 = arith.constant 0 : i32
    return %c0_i32, %c0_i32_0 : i32, i32
  }
  func.func @transform_4(%arg0: i32) -> (i32, i32) {
    %c0_i32 = arith.constant 0 : i32
    %c0_i32_0 = arith.constant 0 : i32
    %c0_i32_1 = arith.constant 0 : i32
    return %c0_i32, %c0_i32_0 : i32, i32
  }
  func.func @transform_5(%arg0: i32) -> (i32, i32) {
    %c0_i32 = arith.constant 0 : i32
    %c0_i32_0 = arith.constant 0 : i32
    return %arg0, %c0_i32 : i32, i32
  }
}

</mosaic_0001>

<bundles_post_ra>
// kernel: tpu_custom_call.1
= control target key start
LH: loop header
LB: loop body
LE: loop exit
PB: predicated region body
PF: predicated region fallthrough
CT: control target
= control target key end

     0   :  { %10 = vsyncpa [#allocation3], 0  ;;  %s814_s0 = inlined_call_operand.hbm [shape: bf16[56,128], index: 0, kind: input, shape index: {}]   ;;  %s815_s1 = inlined_call_operand.hbm [shape: bf16[128,128], index: 1, kind: input, shape index: {}]   ;;  %s816_s2 = inlined_call_operand.hbm [shape: f32[1,128], index: 2, kind: input, shape index: {}]   ;;  %s817_s3 = inlined_call_operand.hbm [shape: bf16[128,128], index: 3, kind: input, shape index: {}]   ;;  %s818_s4 = inlined_call_operand.hbm [shape: f32[1,128], index: 4, kind: input, shape index: {}]   ;;  %s819_s5 = inlined_call_operand.hbm [shape: f32[56,128], index: 5, kind: output, shape index: {}]  }
   0x1   :  { %11 = vsyncpa [#allocation6], 0 }
   0x2   :  { %12 = vsyncpa [#allocation9], 0 }
   0x3   :  { %13 = vsyncpa [#allocation4], 0  ;;  %s686_s18 = smov [#allocation5]   ;;  %s687_s20 = smov [#allocation8]  }
   0x4   :  { %s31_s19 = sshll.u32 %s686_s18, 4  ;;  %s53_s21 = sshll.u32 %s687_s20, 4  ;;  %s32_s19 = int_to_ptr.vmem [resolvable:$true] %s31_s19  ;;  %s726_s21 = int_to_ptr.vmem [resolvable:$true] %s53_s21 }
   0x5   :  { %s546_s24 = scalar_lea.hbm %s815_s1, 1024 }
   0x6   :  { %p547_p0 = scmp.ne.s32.totalorder %s815_s1, %s546_s24  ;;  %p550_p1 = scmp.lt.u32.totalorder %s546_s24, %s815_s1 }
   0x8   :  { %p552_p2 = pnand %p550_p1, %p547_p0 }
   0xa   :  { %555 = shalt.err (!%p552_p2)
}
   0xb   :  { %s556_s29 = scalar_lea.vmem %s32_s19, 1024  ;;  %p561_p4 = scmp.lt.s32.totalorder %s32_s19, %s32_s19 }
   0xc   :  { %p557_p3 = scmp.ne.s32.totalorder %s32_s19, %s556_s29  ;;  %p562_p5 = scmp.lt.s32.totalorder %s556_s29, %s556_s29 }
   0xe   :  { %p563_p6 = por %p562_p5, %p561_p4 }
  0x10   :  { %p564_p7 = pnand %p563_p6, %p557_p3 }
  0x12   :  { %567 = shalt.err (!%p564_p7)
}
  0x13   :  { %s688_s30 = smov 64   ;;  %s689_s6 = smov 4  }
  0x14   :  { %37 = dma.hbm_to_vmem [thread:$0]  %s815_s1, 1024, %s32_s19, [#allocation6], %s688_s30, %s688_s30, %s689_s6  }
  0x15   :  { %s568_s11 = scalar_lea.hbm %s817_s3, 1024 }
  0x16   :  { %p569_p8 = scmp.ne.s32.totalorder %s817_s3, %s568_s11  ;;  %p572_p9 = scmp.lt.u32.totalorder %s568_s11, %s817_s3 }
  0x18   :  { %p574_p10 = pnand %p572_p9, %p569_p8 }
  0x1a   :  { %577 = shalt.err (!%p574_p10)
}
  0x1b   :  { %s578_s16 = scalar_lea.vmem %s726_s21, 1024  ;;  %p583_p12 = scmp.lt.s32.totalorder %s726_s21, %s726_s21 }
  0x1c   :  { %p579_p11 = scmp.ne.s32.totalorder %s726_s21, %s578_s16  ;;  %p584_p13 = scmp.lt.s32.totalorder %s578_s16, %s578_s16 }
  0x1e   :  { %p585_p0 = por %p584_p13, %p583_p12 }
  0x20   :  { %p586_p1 = pnand %p585_p0, %p579_p11 }
  0x22   :  { %589 = shalt.err (!%p586_p1)
}
  0x23   :  { %59 = dma.hbm_to_vmem [thread:$0]  %s817_s3, 1024, %s726_s21, [#allocation9], %s688_s30, %s688_s30, %s689_s6  }
  0x24   :  { %s690_s18 = smov [#allocation2]   ;;  %s691_s20 = smov [#allocation7]  }
  0x25   :  { %s19_s19 = sshll.u32 %s690_s18, 4  ;;  %s44_s22 = sshll.u32 %s691_s20, 4  ;;  %s20_s19 = int_to_ptr.vmem [resolvable:$true] %s19_s19  ;;  %s45_s22 = int_to_ptr.vmem [resolvable:$true] %s44_s22 }
  0x26   :  { %s590_s25 = scalar_lea.hbm %s814_s0, 448 }
  0x27   :  { %p591_p2 = scmp.ne.s32.totalorder %s814_s0, %s590_s25  ;;  %p594_p3 = scmp.lt.u32.totalorder %s590_s25, %s814_s0 }
  0x29   :  { %p596_p4 = pnand %p594_p3, %p591_p2 }
  0x2b   :  { %599 = shalt.err (!%p596_p4)
}
  0x2c   :  { %s600_s3 = scalar_lea.vmem %s20_s19, 448  ;;  %p605_p6 = scmp.lt.s32.totalorder %s20_s19, %s20_s19 }
  0x2d   :  { %p601_p5 = scmp.ne.s32.totalorder %s20_s19, %s600_s3  ;;  %p606_p7 = scmp.lt.s32.totalorder %s600_s3, %s600_s3 }
  0x2f   :  { %p607_p8 = por %p606_p7, %p605_p6 }
  0x31   :  { %p608_p9 = pnand %p607_p8, %p601_p5 }
  0x33   :  { %611 = shalt.err (!%p608_p9)
}
  0x34   :  { %25 = dma.hbm_to_vmem [thread:$0]  %s814_s0, 448, %s20_s19, [#allocation3], %s688_s30, %s688_s30, %s689_s6  }
  0x35   :  { %s612_s10 = scalar_lea.hbm %s816_s2, 16 }
  0x36   :  { %p613_p10 = scmp.ne.s32.totalorder %s816_s2, %s612_s10  ;;  %p616_p11 = scmp.lt.u32.totalorder %s612_s10, %s816_s2 }
  0x38   :  { %p618_p12 = pnand %p616_p11, %p613_p10 }
  0x3a   :  { %621 = shalt.err (!%p618_p12)
}
  0x3b   :  { %s622_s15 = scalar_lea.vmem %s45_s22, 16  ;;  %s626_s16 = scalar_lea.vmem %s45_s22, 32 }
  0x3c   :  { %p623_p13 = scmp.ne.s32.totalorder %s45_s22, %s622_s15  ;;  %p627_p0 = scmp.lt.s32.totalorder %s45_s22, %s45_s22 }
  0x3d   :  { %p628_p1 = scmp.lt.s32.totalorder %s626_s16, %s622_s15 }
  0x3f   :  { %p629_p2 = por %p628_p1, %p627_p0 }
  0x41   :  { %p630_p3 = pnand %p629_p2, %p623_p13 }
  0x43   :  { %633 = shalt.err (!%p630_p3)
}
  0x44   :  { %47 = dma.hbm_to_vmem [thread:$0]  %s816_s2, 16, %s45_s22, [#allocation6]  }
  0x45   :  { %s692_s6 = smov [#allocation10]   ;;  %s634_s19 = scalar_lea.hbm %s818_s4, 16 }
  0x46   :  { %s66_s1 = sshll.u32 %s692_s6, 4  ;;  %p635_p4 = scmp.ne.s32.totalorder %s818_s4, %s634_s19  ;;  %s67_s1 = int_to_ptr.vmem [resolvable:$true] %s66_s1 }
  0x47   :  { %p638_p5 = scmp.lt.u32.totalorder %s634_s19, %s818_s4 }
  0x49   :  { %p640_p6 = pnand %p638_p5, %p635_p4 }
  0x4b   :  { %643 = shalt.err (!%p640_p6)
}
  0x4c   :  { %s644_s26 = scalar_lea.vmem %s67_s1, 16  ;;  %s648_s2 = scalar_lea.vmem %s67_s1, 32 }
  0x4d   :  { %p645_p7 = scmp.ne.s32.totalorder %s67_s1, %s644_s26  ;;  %p649_p8 = scmp.lt.s32.totalorder %s67_s1, %s67_s1 }
  0x4e   :  { %p650_p9 = scmp.lt.s32.totalorder %s648_s2, %s644_s26 }
  0x50   :  { %p651_p10 = por %p650_p9, %p649_p8 }
  0x52   :  { %p652_p11 = pnand %p651_p10, %p645_p7 }
  0x54   :  { %655 = shalt.err (!%p652_p11)
}
  0x55   :  { %69 = dma.hbm_to_vmem [thread:$0]  %s818_s4, 16, %s67_s1, [#allocation9]  }
  0x56   :  { %678 = dma.done.wait [#allocation3], 448  }
  0x57   :  { %679 = vsyncadd [#allocation3], 4294966848 }
  0x58   :  { %680 = dma.done.wait [#allocation6], 1040  }
  0x59   :  { %681 = vsyncadd [#allocation6], 4294966256 }
  0x5a   :  { %682 = dma.done.wait [#allocation9], 1040  }
  0x5b   :  { %683 = vsyncadd [#allocation9], 4294966256  ;;  %v526_v0 = vld [vmem:[#allocation5] sm:$0xff]   ;;  %v527_v1 = vld [vmem:[#allocation5 + $0x8] sm:$0xff]   ;;  %s693_s4 = smov [#allocation11]  }
  0x5c   :  { %468 = vmatprep.subr.bf16.mxu0 %v526_v0  ;;  %v528_v2 = vld [vmem:[#allocation5 + $0x10] sm:$0xff]   ;;  %v529_v3 = vld [vmem:[#allocation5 + $0x18] sm:$0xff]   ;;  %v534_v4 = vld [vmem:[#allocation2] sm:$0xff]   ;;  %s408_s28 = sshll.u32 %s693_s4, 4  ;;  %s409_s28 = int_to_ptr.vmem [resolvable:$true] %s408_s28 }
  0x5d   :  { %469 = vmatpush3.bf16.msra.mxu0 %v526_v0  ;;  %484 = vmatprep.mubr.bf16.mxu0 %v534_v4  ;;  %v530_v5 = vld [vmem:[#allocation5 + $0x20] sm:$0xff]   ;;  %v539_v7 = vld [vmem:[#allocation8 + $0x8] sm:$0xff]   ;;  %v540_v9 = vld [vmem:[#allocation8 + $0x10] sm:$0xff]   ;;  %s656_s29 = scalar_lea.vmem %s409_s28, 896  ;;  %p661_p13 = scmp.lt.s32.totalorder %s409_s28, %s409_s28 }
  0x5e   :  { %470 = vmatprep.subr.bf16.mxu0 %v527_v1  ;;  %v538_v6 = vld [vmem:[#allocation8] sm:$0xff]   ;;  %v532_v10 = vld [vmem:[#allocation5 + $0x30] sm:$0xff]   ;;  %v541_v11 = vld [vmem:[#allocation8 + $0x18] sm:$0xff]   ;;  %p657_p12 = scmp.ne.s32.totalorder %s409_s28, %s656_s29  ;;  %p662_p0 = scmp.lt.s32.totalorder %s656_s29, %s656_s29 }
  0x5f   :  { %492 = vmatprep.subr.bf16.mxu1 %v538_v6  ;;  %v531_v8 = vld [vmem:[#allocation5 + $0x28] sm:$0xff]   ;;  %v533_v12 = vld [vmem:[#allocation5 + $0x38] sm:$0xff]   ;;  %v422_v20 = vld [vmem:[#allocation7] ss:$0 sm:$0xff] }
  0x60   :  { %493 = vmatpush3.bf16.msra.mxu1 %v538_v6  ;;  %v542_v13 = vld [vmem:[#allocation8 + $0x20] sm:$0xff]   ;;  %v543_v14 = vld [vmem:[#allocation8 + $0x28] sm:$0xff]   ;;  %v536_v16 = vld [vmem:[#allocation2 + $0x10] sm:$0xff]   ;;  %p663_p1 = por %p662_p0, %p661_p13 }
  0x61   :  { %471 = vmatpush3.bf16.msra.mxu0 %v527_v1  ;;  %494 = vmatprep.subr.bf16.mxu1 %v539_v7  ;;  %v535_v15 = vld [vmem:[#allocation2 + $0x8] sm:$0xff]   ;;  %v537_v17 = vld [vmem:[#allocation2 + $0x18] ss:$0 sps:$4 sm:$0xff]   ;;  %v435_v47 = vld [vmem:[#allocation10] ss:$0 sm:$0xff] }
  0x62   :  { %472 = vmatprep.subr.bf16.mxu0 %v528_v2  ;;  %v544_v18 = vld [vmem:[#allocation8 + $0x30] sm:$0xff]   ;;  %v545_v19 = vld [vmem:[#allocation8 + $0x38] sm:$0xff]   ;;  %p664_p2 = pnand %p663_p1, %p657_p12 }
  0x64   :  { %495 = vmatpush3.bf16.msra.mxu1 %v539_v7 }
  0x65   :  { %473 = vmatpush3.bf16.msra.mxu0 %v528_v2  ;;  %496 = vmatprep.subr.bf16.mxu1 %v540_v9 }
  0x66   :  { %474 = vmatprep.subr.bf16.mxu0 %v529_v3 }
  0x68   :  { %497 = vmatpush3.bf16.msra.mxu1 %v540_v9 }
  0x69   :  { %475 = vmatpush3.bf16.msra.mxu0 %v529_v3  ;;  %498 = vmatprep.subr.bf16.mxu1 %v541_v11 }
  0x6a   :  { %476 = vmatprep.subr.bf16.mxu0 %v530_v5 }
  0x6c   :  { %499 = vmatpush3.bf16.msra.mxu1 %v541_v11 }
  0x6d   :  { %477 = vmatpush3.bf16.msra.mxu0 %v530_v5  ;;  %500 = vmatprep.subr.bf16.mxu1 %v542_v13 }
  0x6e   :  { %478 = vmatprep.subr.bf16.mxu0 %v531_v8 }
  0x70   :  { %501 = vmatpush3.bf16.msra.mxu1 %v542_v13 }
  0x71   :  { %479 = vmatpush3.bf16.msra.mxu0 %v531_v8  ;;  %502 = vmatprep.subr.bf16.mxu1 %v543_v14 }
  0x72   :  { %480 = vmatprep.subr.bf16.mxu0 %v532_v10 }
  0x74   :  { %503 = vmatpush3.bf16.msra.mxu1 %v543_v14 }
  0x75   :  { %481 = vmatpush3.bf16.msra.mxu0 %v532_v10  ;;  %504 = vmatprep.subr.bf16.mxu1 %v544_v18 }
  0x76   :  { %482 = vmatprep.subr.bf16.mxu0 %v533_v12 }
  0x78   :  { %505 = vmatpush3.bf16.msra.mxu1 %v544_v18 }
  0x79   :  { %483 = vmatpush3.bf16.msra.mxu0 %v533_v12  ;;  %506 = vmatprep.subr.bf16.mxu1 %v545_v19 }
  0x7c   :  { %485 = vmatmul.mubr.bf16.vlgmr.msra.gmra.mrb[0].mxu0 %v535_v15  ;;  %507 = vmatpush3.bf16.msra.mxu1 %v545_v19 }
  0x7d   :  { %488 = vmatprep.mubr.bf16.mxu0 %v536_v16 }
  0x84   :  { %489 = vmatmul.mubr.bf16.gmra.mrb[4].mxu0 %v537_v17 }
 0x14f   :  { %v486_v21 = vpop.f32.mrb[0].mxu0 }
 0x150   :  { %v229_v22 = vadd.f32 %v486_v21, %v422_v20  ;;  %v220_v23 = vpop.f32.mrb[1].mxu0 }
 0x151   :  { %v221_v24 = vadd.f32 %v422_v20, %v220_v23  ;;  %v487_v25 = vpop.f32.mrb[2].mxu0 }
 0x152   :  { %v232_v26 = vadd.f32 %v487_v25, %v422_v20  ;;  %v223_v27 = vpop.f32.mrb[3].mxu0  ;;  %v252_v29 = vmax.f32 %v229_v22, 0.0 }
 0x153   :  { %v224_v28 = vadd.f32 %v422_v20, %v223_v27  ;;  %v250_v31 = vmax.f32 %v221_v24, 0.0 }
 0x154   :  { %v253_v30 = vmax.f32 %v232_v26, 0.0 }
 0x155   :  { %v251_v32 = vmax.f32 %v224_v28, 0.0 }
 0x156   :  { %v258_v33 = vpack.c.bf16 %v253_v30, %v252_v29 }
 0x157   :  { %v490_v34 = vpop.f32.mrb[4].mxu0  ;;  %v257_v35 = vpack.c.bf16 %v251_v32, %v250_v31 }
 0x158   :  { %v245_v36 = vadd.f32 %v490_v34, %v422_v20  ;;  %v236_v37 = vpop.f32.mrb[5].mxu0 }
 0x159   :  { %v237_v38 = vadd.f32 %v422_v20, %v236_v37  ;;  %v491_v39 = vpop.f32.mrb[6].mxu0  ;;  %508 = vmatprep.mubr.bf16.mxu1 %v257_v35 }
 0x15a   :  { %v239_v40 = vpop.f32.mrb[7].mxu0  ;;  %509 = vmatmul.mubr.bf16.vlgmr.msra.gmra.mrb[0].mxu1 %v258_v33  ;;  %v256_v42 = vmax.f32 %v245_v36, 0.0 }
 0x15b   :  { %v240_v41 = vadd.f32 %v422_v20, %v239_v40  ;;  %v254_v43 = vmax.f32 %v237_v38, 0.0 }
 0x15c   :  { %v260_v46 = vpack.c.bf16 %v256_v42, %v256_v42 }
 0x15d   :  { %v255_v44 = vmax.f32 %v240_v41, 0.0 }
 0x15f   :  { %v259_v45 = vpack.c.bf16 %v255_v44, %v254_v43 }
 0x161   :  { %512 = vmatprep.mubr.bf16.mxu1 %v259_v45 }
 0x162   :  { %513 = vmatmul.mubr.bf16.gmra.mrb[4].mxu1 %v260_v46 }
 0x22d   :  { %v510_v48 = vpop.f32.mrb[0].mxu1 }
 0x22e   :  { %v375_v49 = vadd.f32 %v510_v48, %v435_v47  ;;  %v366_v50 = vpop.f32.mrb[1].mxu1 }
 0x22f   :  { %v367_v51 = vadd.f32 %v435_v47, %v366_v50  ;;  %v511_v52 = vpop.f32.mrb[2].mxu1 }
 0x230   :  { %398 = vst [vmem:[#allocation11 + $0x10] sm:$0xff] %v375_v49  ;;  %v378_v53 = vadd.f32 %v511_v52, %v435_v47  ;;  %v369_v54 = vpop.f32.mrb[3].mxu1 }
 0x231   :  { %396 = vst [vmem:[#allocation11] sm:$0xff] %v367_v51  ;;  %v370_v55 = vadd.f32 %v435_v47, %v369_v54 }
 0x232   :  { %399 = vst [vmem:[#allocation11 + $0x18] sm:$0xff] %v378_v53 }
 0x233   :  { %397 = vst [vmem:[#allocation11 + $0x8] sm:$0xff] %v370_v55 }
 0x235   :  { %v514_v56 = vpop.f32.mrb[4].mxu1 }
 0x236   :  { %v391_v57 = vadd.f32 %v514_v56, %v435_v47  ;;  %v382_v58 = vpop.f32.mrb[5].mxu1 }
 0x237   :  { %v383_v59 = vadd.f32 %v435_v47, %v382_v58  ;;  %v515_v60 = vpop.f32.mrb[6].mxu1 }
 0x238   :  { %402 = vst [vmem:[#allocation11 + $0x30] sm:$0xff] %v391_v57  ;;  %v385_v61 = vpop.f32.mrb[7].mxu1 }
 0x239   :  { %400 = vst [vmem:[#allocation11 + $0x20] sm:$0xff] %v383_v59  ;;  %v386_v62 = vadd.f32 %v435_v47, %v385_v61 }
 0x23b   :  { %401 = vst [vmem:[#allocation11 + $0x28] sm:$0xff] %v386_v62 }
 0x23c   :  { %667 = shalt.err (!%p664_p2)
}
 0x23d   :  { %s668_s7 = scalar_lea.hbm %s819_s5, 896 }
 0x23e   :  { %p669_p3 = scmp.ne.s32.totalorder %s819_s5, %s668_s7  ;;  %p672_p4 = scmp.lt.u32.totalorder %s668_s7, %s819_s5 }
 0x240   :  { %p674_p5 = pnand %p672_p4, %p669_p3 }
 0x242   :  { %677 = shalt.err (!%p674_p5)
}
 0x243   :  { %s694_s12 = smov 128   ;;  %s695_s13 = smov 8  }
 0x244   :  { %414 = dma.vmem_to_hbm [thread:$0]  %s409_s28, 896, %s819_s5, [#allocation4], %s694_s12, %s694_s12, %s695_s13  }
 0x245   :  { %684 = dma.done.wait [#allocation4], 896  }
 0x246   :  { %685 = vsyncadd [#allocation4], 4294966400 }
 0x247   :  { %418 = vsyncpa [#allocation3], 1 }
 0x248   :  { %419 = vsyncpa [#allocation6], 1 }
 0x249   :  { %420 = vsyncpa [#allocation9], 1 }
 0x24a   :  { %421 = vsyncpa [#allocation4], 1 }

</bundles_post_ra>
